<compile_context>
chip_gen: v5e
topology: v5e:2x2
jax: 0.10.0
libtpu: 0.0.40
codegen_flags: <defaults>
</compile_context>

<pallas_src>
import functools

import jax
import jax.numpy as jnp
from jax import lax
from jax.experimental import pallas as pl
from jax.experimental.pallas import tpu as pltpu

LN_EPS = 1e-5            # torch.nn.LayerNorm default eps
LANE = 128               # TPU lane width (last dim)
SUBLANE = 8              # f32 sublane granularity (second-to-last dim)
MAX_BATCH_TILE = 512     # rows per grid step (v6e: 512-row tiles ~85% of HBM roofline)
COMPUTE_DTYPE = jnp.bfloat16   # MXU operand dtype (accumulation stays f32)


def _round_up(v, m):
    return ((v + m - 1) // m) * m


def _cdiv(a, b):
    return (a + b - 1) // b


def _vmem_cap_bytes():
    """Physical VMEM capacity with headroom; safe fallback = 56 MiB (< v7x 64 MiB)."""
    try:
        cap = int(pltpu.get_tpu_info().vmem_capacity_bytes)
    except Exception:
        cap = 64 * 1024 * 1024
    return int(cap * 0.875)


# ---------------------------------------------------------------------------
# Fused kernel: [Linear + LayerNorm + PReLU + Dropout(id)] * H  + final Linear
# ---------------------------------------------------------------------------
def _encoder_fused_kernel(hidden_dims, x_ref, *refs):
    """
    hidden_dims : static tuple of TRUE (unpadded) hidden widths
    x_ref       : (B_tile, Din_pad) f32, blocked over batch
    refs        : per hidden layer (w_bf16, vec_f32), then (w_final_bf16,
                  b_final_f32), then out_ref (B_tile, Dout_pad) f32.
                  vec rows: 0=Linear bias, 1=LN gamma, 2=LN beta, 3=PReLU alpha.
    """
    out_ref = refs[-1]
    p = refs[:-1]

    h = x_ref[...]                                  # f32 activations
    idx = 0
    for d_true in hidden_dims:
        w_ref, vec_ref = p[idx], p[idx + 1]
        idx += 2

        # ---- Linear: bf16 x bf16 -> f32 accumulate (MXU) -----------------
        y = jnp.dot(h.astype(w_ref.dtype), w_ref[...],
                    preferred_element_type=jnp.float32)
        y = y + vec_ref[0:1, :]                     # bias (f32)

        d_pad = y.shape[-1]
        n_pad = d_pad - d_true                      # static python int

        # ---- LayerNorm over the TRUE feature width (f32) ------------------
        # Padded columns of y are exactly zero (zero-padded weights & bias):
        #   mean_true           = sum_all(y) / d_true
        #   sum_all((y-mean)^2) = sum_true((y-mean)^2) + n_pad * mean^2
        # so the pad contribution is removed analytically -- no iota/where mask.
        inv_d = jnp.float32(1.0 / d_true)
        mean = jnp.sum(y, axis=-1, keepdims=True) * inv_d
        diff = y - mean
        ssq = jnp.sum(diff * diff, axis=-1, keepdims=True)
        if n_pad:
            ssq = ssq - jnp.float32(n_pad) * (mean * mean)
        y = diff * lax.rsqrt(ssq * inv_d + LN_EPS)
        # gamma/beta are zero in padded columns -> pads stay exactly 0.
        y = y * vec_ref[1:2, :] + vec_ref[2:3, :]

        # ---- PReLU (single shared alpha, broadcast along the feature row) --
        h = jnp.where(y >= 0.0, y, vec_ref[3:4, :] * y)

        # ---- Dropout: identity (eval mode) ---------------------------------
        # TODO(synk): training-mode dropout (mask + 1/(1-p)) not implemented.

    # ---- Final Linear -------------------------------------------------------
    wf_ref, bf_ref = p[idx], p[idx + 1]
    y = jnp.dot(h.astype(wf_ref.dtype), wf_ref[...],
                preferred_element_type=jnp.float32) + bf_ref[...]
    out_ref[...] = y.astype(out_ref.dtype)


# ---------------------------------------------------------------------------
# Parameter construction (torch-equivalent shapes) and packing for the kernel
# ---------------------------------------------------------------------------
def init_encoder_params(key, input_dim, n, e_dim, hidden_dim):
    """Deterministic synthetic parameters matching the torch module's shapes.
    Weights are stored (in_features, out_features) -- torch Linear weight
    transposed -- so the kernel hot path is a plain row-major matmul."""
    params = {"hidden": [], "final": None}
    indim = input_dim
    for h_dim in hidden_dim:
        key, kw, kb = jax.random.split(key, 3)
        bound = 1.0 / float(indim) ** 0.5
        w = jax.random.uniform(kw, (indim, h_dim), jnp.float32, -bound, bound)
        b = jax.random.uniform(kb, (h_dim,), jnp.float32, -bound, bound)
        gamma = jnp.ones((h_dim,), jnp.float32)      # LayerNorm weight
        beta = jnp.zeros((h_dim,), jnp.float32)      # LayerNorm bias
        alpha = jnp.float32(0.25)                    # PReLU default init
        params["hidden"].append((w, b, gamma, beta, alpha))
        indim = h_dim
    key, kw, kb = jax.random.split(key, 3)
    out_dim = n * e_dim
    bound = 1.0 / float(indim) ** 0.5
    w = jax.random.uniform(kw, (indim, out_dim), jnp.float32, -bound, bound)
    b = jax.random.uniform(kb, (out_dim,), jnp.float32, -bound, bound)
    params["final"] = (w, b)
    return params


def pack_encoder_params(params, compute_dtype=COMPUTE_DTYPE):
    """Zero-pad every parameter to lane-dense (multiple-of-128) feature dims,
    cast weights to the MXU compute dtype, and pack per-layer (bias, gamma,
    beta, alpha) into one (4, D_pad) f32 block."""
    flat = []
    hidden_dims = []
    if params["hidden"]:
        input_dim = params["hidden"][0][0].shape[0]
    else:
        input_dim = params["final"][0].shape[0]

    d_in = input_dim
    for (w, b, gamma, beta, alpha) in params["hidden"]:
        d_out = w.shape[1]
        din_p, dout_p = _round_up(d_in, LANE), _round_up(d_out, LANE)
        w_p = (jnp.zeros((din_p, dout_p), jnp.float32)
               .at[:d_in, :d_out].set(w).astype(compute_dtype))
        vec = jnp.zeros((4, dout_p), jnp.float32)
        vec = vec.at[0, :d_out].set(b)
        vec = vec.at[1, :d_out].set(gamma)
        vec = vec.at[2, :d_out].set(beta)
        vec = vec.at[3, :].set(jnp.asarray(alpha, jnp.float32))  # pads of y are 0
        flat += [w_p, vec]
        hidden_dims.append(d_out)
        d_in = d_out

    w, b = params["final"]
    out_dim = w.shape[1]
    din_p, dout_p = _round_up(d_in, LANE), _round_up(out_dim, LANE)
    w_p = (jnp.zeros((din_p, dout_p), jnp.float32)
           .at[:d_in, :out_dim].set(w).astype(compute_dtype))
    b_p = jnp.zeros((1, dout_p), jnp.float32).at[0, :out_dim].set(b)
    flat += [w_p, b_p]

    dims = (input_dim, tuple(hidden_dims), out_dim)
    return tuple(flat), dims


# ---------------------------------------------------------------------------
# Forward: single jit dispatch, single fused pallas_call
# ---------------------------------------------------------------------------
@functools.partial(jax.jit, static_argnames=("dims",))
def _encoder_forward_padded(flat_params, x, dims):
    input_dim, hidden_dims, out_dim = dims
    batch = x.shape[0]
    din_pad = _round_up(input_dim, LANE)
    dout_pad = _round_up(out_dim, LANE)

    # Batch tile: sublane-dense; give the grid >= 2 steps whenever the batch
    # allows so both v7x TensorCores get work ("parallel" axis is sharded).
    if batch >= 2 * SUBLANE:
        b_tile = min(MAX_BATCH_TILE, _round_up(_cdiv(batch, 2), SUBLANE))
    else:
        b_tile = _round_up(max(batch, 1), SUBLANE)
    b_pad = _round_up(batch, b_tile)

    # Pad only when actually required (skip the extra HBM read+write otherwise).
    if b_pad != batch or din_pad != input_dim:
        x_p = jnp.pad(x, ((0, b_pad - batch), (0, din_pad - input_dim)))
    else:
        x_p = x

    grid = (b_pad // b_tile,)

    x_spec = pl.BlockSpec((b_tile, din_pad), lambda i: (i, 0))
    # Parameters: whole-array, resident in VMEM, single-buffered.
    param_specs = [pl.BlockSpec(memory_space=pltpu.MemorySpace.VMEM)
                   for _ in flat_params]
    out_spec = pl.BlockSpec((b_tile, dout_pad), lambda i: (i, 0))

    # ---- explicit VMEM budget (re-derived per generation via headroomed cap) --
    param_bytes = sum(int(p.size) * p.dtype.itemsize for p in flat_params)
    io_bytes = 2 * (b_tile * din_pad + b_tile * dout_pad) * 4   # double-buffered x/out
    max_dpad = max([_round_up(d, LANE) for d in hidden_dims] + [din_pad, dout_pad])
    act_bytes = 6 * b_tile * max_dpad * 4                       # per-layer temporaries
    needed = int((param_bytes + io_bytes + act_bytes) * 1.25)
    vmem_limit = int(min(max(needed, 16 * 1024 * 1024), _vmem_cap_bytes()))

    # ---- cost estimate hint for XLA scheduling --------------------------------
    dims_chain = (input_dim,) + tuple(hidden_dims) + (out_dim,)
    flops = 2 * batch * sum(dims_chain[i] * dims_chain[i + 1]
                            for i in range(len(dims_chain) - 1))
    bytes_accessed = param_bytes + batch * input_dim * 4 + batch * out_dim * 4
    cost = pl.CostEstimate(flops=flops,
                           transcendentals=batch * len(hidden_dims),
                           bytes_accessed=bytes_accessed)

    kernel = functools.partial(_encoder_fused_kernel, tuple(hidden_dims))

    out = pl.pallas_call(
        kernel,
        out_shape=jax.ShapeDtypeStruct((b_pad, dout_pad), jnp.float32),
        grid=grid,
        in_specs=[x_spec] + param_specs,
        out_specs=out_spec,
        compiler_params=pltpu.CompilerParams(
            dimension_semantics=("parallel",),    # batch tiles are independent
            vmem_limit_bytes=vmem_limit,
        ),
        cost_estimate=cost,
    )(x_p, *flat_params)

    return out[:batch, :out_dim]


def encoder_forward(flat_params, dims, x):
    """x: (batch, input_dim) -> (batch, n*e_dim)"""
    return _encoder_forward_padded(flat_params, x, dims)


# ---------------------------------------------------------------------------
# Pure-JAX references for correctness checking
# ---------------------------------------------------------------------------
def encoder_forward_ref(params, x):
    """Exact f32 reference (torch-module eval-mode semantics)."""
    h = x
    for (w, b, gamma, beta, alpha) in params["hidden"]:
        y = h @ w + b
        mean = jnp.mean(y, axis=-1, keepdims=True)
        var = jnp.mean((y - mean) ** 2, axis=-1, keepdims=True)
        y = (y - mean) / jnp.sqrt(var + LN_EPS)
        y = y * gamma + beta
        h = jnp.where(y >= 0.0, y, alpha * y)
    w, b = params["final"]
    return h @ w + b


def encoder_forward_ref_matched(params, x, compute_dtype=COMPUTE_DTYPE):
    """Reference using the same bf16 matmul operands as the kernel
    (f32 accumulation, f32 elementwise): isolates kernel correctness from the
    bf16 weight-storage decision."""
    h = x
    for (w, b, gamma, beta, alpha) in params["hidden"]:
        y = jnp.dot(h.astype(compute_dtype), w.astype(compute_dtype),
                    preferred_element_type=jnp.float32) + b
        mean = jnp.mean(y, axis=-1, keepdims=True)
        var = jnp.mean((y - mean) ** 2, axis=-1, keepdims=True)
        y = (y - mean) / jnp.sqrt(var + LN_EPS)
        y = y * gamma + beta
        h = jnp.where(y >= 0.0, y, alpha * y)
    w, b = params["final"]
    return jnp.dot(h.astype(compute_dtype), w.astype(compute_dtype),
                   preferred_element_type=jnp.float32) + b


# ---------------------------------------------------------------------------
# Main
# ---------------------------------------------------------------------------
if __name__ == "__main__":
    # Small shapes consistent with the module's forward contract.
    batch = 2
    input_dim = 32
    n = 4
    e_dim = 8
    hidden_dim = (64, 32)
    dropout_rate = 0.1  # unused in eval-mode forward

    key = jax.random.PRNGKey(0)
    key_p, key_x = jax.random.split(key)

    params = init_encoder_params(key_p, input_dim, n, e_dim, hidden_dim)
    x = jax.random.normal(key_x, (batch, input_dim), jnp.float32)

    flat_params, dims = pack_encoder_params(params)

    out = encoder_forward(flat_params, dims, x)
    out = jax.block_until_ready(out)

    assert out.shape == (batch, n * e_dim), out.shape

    # Tight check vs a reference that mirrors the kernel's bf16 matmul operands.
    ref_matched = encoder_forward_ref_matched(params, x)
    err_m = float(jnp.max(jnp.abs(out - ref_matched)))
    assert jnp.allclose(out, ref_matched, atol=1e-4, rtol=1e-4), (
        f"mismatch vs precision-matched reference, max abs err {err_m}")

    # Loose sanity check vs the exact f32 reference (bf16 weight quantization).
    ref_f32 = encoder_forward_ref(params, x)
    err_f = float(jnp.max(jnp.abs(out - ref_f32)))
    assert jnp.allclose(out, ref_f32, atol=1e-1, rtol=1e-1), (
        f"mismatch vs f32 reference, max abs err {err_f}")

    print("KERNEL_OK")
</pallas_src>

<mosaic_0001>
module attributes {stable_mosaic.version = 11 : i64} {
  func.func @_encoder_fused_kernel(%arg0: i32, %arg1: memref<8x128xf32, #tpu.memory_space<vmem>>, %arg2: memref<128x128xbf16, #tpu.memory_space<vmem>>, %arg3: memref<4x128xf32, #tpu.memory_space<vmem>>, %arg4: memref<128x128xbf16, #tpu.memory_space<vmem>>, %arg5: memref<4x128xf32, #tpu.memory_space<vmem>>, %arg6: memref<128x128xbf16, #tpu.memory_space<vmem>>, %arg7: memref<1x128xf32, #tpu.memory_space<vmem>>, %arg8: memref<8x128xf32, #tpu.memory_space<vmem>>) attributes {dimension_semantics = [#tpu.dimension_semantics<parallel>], iteration_bounds = array<i64: 1>, scalar_prefetch = 0 : i64, scratch_operands = 0 : i64, tpu.core_type = #tpu.core_type<tc>, window_params = [{transform_indices = @transform_0, window_bounds = array<i64: 8, 128>}, {pipeline_mode = #tpu.pipeline_mode<synchronous>, transform_indices = @transform_1, window_bounds = array<i64: 128, 128>}, {pipeline_mode = #tpu.pipeline_mode<synchronous>, transform_indices = @transform_2, window_bounds = array<i64: 4, 128>}, {pipeline_mode = #tpu.pipeline_mode<synchronous>, transform_indices = @transform_3, window_bounds = array<i64: 128, 128>}, {pipeline_mode = #tpu.pipeline_mode<synchronous>, transform_indices = @transform_4, window_bounds = array<i64: 4, 128>}, {pipeline_mode = #tpu.pipeline_mode<synchronous>, transform_indices = @transform_5, window_bounds = array<i64: 128, 128>}, {pipeline_mode = #tpu.pipeline_mode<synchronous>, transform_indices = @transform_6, window_bounds = array<i64: 1, 128>}, {transform_indices = @transform_7, window_bounds = array<i64: 8, 128>}]} {
    %c0 = arith.constant 0 : index
    %c0_0 = arith.constant 0 : index
    %0 = vector.load %arg1[%c0, %c0_0] : memref<8x128xf32, #tpu.memory_space<vmem>>, vector<8x128xf32>
    %1 = arith.truncf %0 : vector<8x128xf32> to vector<8x128xbf16>
    %c0_1 = arith.constant 0 : index
    %c0_2 = arith.constant 0 : index
    %2 = vector.load %arg2[%c0_1, %c0_2] : memref<128x128xbf16, #tpu.memory_space<vmem>>, vector<128x128xbf16>
    %cst = arith.constant dense<0.000000e+00> : vector<8x128xf32>
    %3 = tpu.matmul %1, %2, %cst {dimension_numbers = #tpu.dot_dimension_numbers<[1], [0], [0], [1], [0, 0, 1, 1], [], []>} : vector<8x128xbf16>, vector<128x128xbf16>, vector<8x128xf32> -> vector<8x128xf32>
    %c0_3 = arith.constant 0 : index
    %c0_4 = arith.constant 0 : index
    %4 = vector.load %arg3[%c0_3, %c0_4] : memref<4x128xf32, #tpu.memory_space<vmem>>, vector<1x128xf32>
    %5 = vector.broadcast %4 : vector<1x128xf32> to vector<8x128xf32>
    %6 = arith.addf %3, %5 : vector<8x128xf32>
    %cst_5 = arith.constant dense<0.000000e+00> : vector<8xf32>
    %7 = vector.multi_reduction <add>, %6, %cst_5 [1] : vector<8x128xf32> to vector<8xf32>
    %8 = vector.shape_cast %7 : vector<8xf32> to vector<8x1xf32>
    %cst_6 = arith.constant 1.562500e-02 : f32
    %9 = vector.broadcast %cst_6 : f32 to vector<8x1xf32>
    %10 = arith.mulf %8, %9 : vector<8x1xf32>
    %11 = vector.broadcast %10 : vector<8x1xf32> to vector<8x128xf32>
    %12 = arith.subf %6, %11 : vector<8x128xf32>
    %13 = arith.mulf %12, %12 : vector<8x128xf32>
    %cst_7 = arith.constant dense<0.000000e+00> : vector<8xf32>
    %14 = vector.multi_reduction <add>, %13, %cst_7 [1] : vector<8x128xf32> to vector<8xf32>
    %15 = vector.shape_cast %14 : vector<8xf32> to vector<8x1xf32>
    %16 = arith.mulf %10, %10 : vector<8x1xf32>
    %cst_8 = arith.constant 6.400000e+01 : f32
    %17 = vector.broadcast %cst_8 : f32 to vector<8x1xf32>
    %18 = arith.mulf %17, %16 : vector<8x1xf32>
    %19 = arith.subf %15, %18 : vector<8x1xf32>
    %cst_9 = arith.constant 1.562500e-02 : f32
    %20 = vector.broadcast %cst_9 : f32 to vector<8x1xf32>
    %21 = arith.mulf %19, %20 : vector<8x1xf32>
    %cst_10 = arith.constant 9.99999974E-6 : f32
    %22 = vector.broadcast %cst_10 : f32 to vector<8x1xf32>
    %23 = arith.addf %21, %22 : vector<8x1xf32>
    %24 = math.rsqrt %23 : vector<8x1xf32>
    %25 = vector.broadcast %24 : vector<8x1xf32> to vector<8x128xf32>
    %26 = arith.mulf %12, %25 : vector<8x128xf32>
    %c1 = arith.constant 1 : index
    %c0_11 = arith.constant 0 : index
    %27 = vector.load %arg3[%c1, %c0_11] : memref<4x128xf32, #tpu.memory_space<vmem>>, vector<1x128xf32>
    %28 = vector.broadcast %27 : vector<1x128xf32> to vector<8x128xf32>
    %29 = arith.mulf %26, %28 : vector<8x128xf32>
    %c2 = arith.constant 2 : index
    %c0_12 = arith.constant 0 : index
    %30 = vector.load %arg3[%c2, %c0_12] : memref<4x128xf32, #tpu.memory_space<vmem>>, vector<1x128xf32>
    %31 = vector.broadcast %30 : vector<1x128xf32> to vector<8x128xf32>
    %32 = arith.addf %29, %31 : vector<8x128xf32>
    %cst_13 = arith.constant 0.000000e+00 : f32
    %33 = vector.broadcast %cst_13 : f32 to vector<8x128xf32>
    %34 = arith.cmpf oge, %32, %33 : vector<8x128xf32>
    %c3 = arith.constant 3 : index
    %c0_14 = arith.constant 0 : index
    %35 = vector.load %arg3[%c3, %c0_14] : memref<4x128xf32, #tpu.memory_space<vmem>>, vector<1x128xf32>
    %36 = vector.broadcast %35 : vector<1x128xf32> to vector<8x128xf32>
    %37 = arith.mulf %36, %32 : vector<8x128xf32>
    %38 = arith.select %34, %32, %37 : vector<8x128xi1>, vector<8x128xf32>
    %39 = arith.truncf %38 : vector<8x128xf32> to vector<8x128xbf16>
    %c0_15 = arith.constant 0 : index
    %c0_16 = arith.constant 0 : index
    %40 = vector.load %arg4[%c0_15, %c0_16] : memref<128x128xbf16, #tpu.memory_space<vmem>>, vector<128x128xbf16>
    %cst_17 = arith.constant dense<0.000000e+00> : vector<8x128xf32>
    %41 = tpu.matmul %39, %40, %cst_17 {dimension_numbers = #tpu.dot_dimension_numbers<[1], [0], [0], [1], [0, 0, 1, 1], [], []>} : vector<8x128xbf16>, vector<128x128xbf16>, vector<8x128xf32> -> vector<8x128xf32>
    %c0_18 = arith.constant 0 : index
    %c0_19 = arith.constant 0 : index
    %42 = vector.load %arg5[%c0_18, %c0_19] : memref<4x128xf32, #tpu.memory_space<vmem>>, vector<1x128xf32>
    %43 = vector.broadcast %42 : vector<1x128xf32> to vector<8x128xf32>
    %44 = arith.addf %41, %43 : vector<8x128xf32>
    %cst_20 = arith.constant dense<0.000000e+00> : vector<8xf32>
    %45 = vector.multi_reduction <add>, %44, %cst_20 [1] : vector<8x128xf32> to vector<8xf32>
    %46 = vector.shape_cast %45 : vector<8xf32> to vector<8x1xf32>
    %cst_21 = arith.constant 3.125000e-02 : f32
    %47 = vector.broadcast %cst_21 : f32 to vector<8x1xf32>
    %48 = arith.mulf %46, %47 : vector<8x1xf32>
    %49 = vector.broadcast %48 : vector<8x1xf32> to vector<8x128xf32>
    %50 = arith.subf %44, %49 : vector<8x128xf32>
    %51 = arith.mulf %50, %50 : vector<8x128xf32>
    %cst_22 = arith.constant dense<0.000000e+00> : vector<8xf32>
    %52 = vector.multi_reduction <add>, %51, %cst_22 [1] : vector<8x128xf32> to vector<8xf32>
    %53 = vector.shape_cast %52 : vector<8xf32> to vector<8x1xf32>
    %54 = arith.mulf %48, %48 : vector<8x1xf32>
    %cst_23 = arith.constant 9.600000e+01 : f32
    %55 = vector.broadcast %cst_23 : f32 to vector<8x1xf32>
    %56 = arith.mulf %55, %54 : vector<8x1xf32>
    %57 = arith.subf %53, %56 : vector<8x1xf32>
    %cst_24 = arith.constant 3.125000e-02 : f32
    %58 = vector.broadcast %cst_24 : f32 to vector<8x1xf32>
    %59 = arith.mulf %57, %58 : vector<8x1xf32>
    %cst_25 = arith.constant 9.99999974E-6 : f32
    %60 = vector.broadcast %cst_25 : f32 to vector<8x1xf32>
    %61 = arith.addf %59, %60 : vector<8x1xf32>
    %62 = math.rsqrt %61 : vector<8x1xf32>
    %63 = vector.broadcast %62 : vector<8x1xf32> to vector<8x128xf32>
    %64 = arith.mulf %50, %63 : vector<8x128xf32>
    %c1_26 = arith.constant 1 : index
    %c0_27 = arith.constant 0 : index
    %65 = vector.load %arg5[%c1_26, %c0_27] : memref<4x128xf32, #tpu.memory_space<vmem>>, vector<1x128xf32>
    %66 = vector.broadcast %65 : vector<1x128xf32> to vector<8x128xf32>
    %67 = arith.mulf %64, %66 : vector<8x128xf32>
    %c2_28 = arith.constant 2 : index
    %c0_29 = arith.constant 0 : index
    %68 = vector.load %arg5[%c2_28, %c0_29] : memref<4x128xf32, #tpu.memory_space<vmem>>, vector<1x128xf32>
    %69 = vector.broadcast %68 : vector<1x128xf32> to vector<8x128xf32>
    %70 = arith.addf %67, %69 : vector<8x128xf32>
    %cst_30 = arith.constant 0.000000e+00 : f32
    %71 = vector.broadcast %cst_30 : f32 to vector<8x128xf32>
    %72 = arith.cmpf oge, %70, %71 : vector<8x128xf32>
    %c3_31 = arith.constant 3 : index
    %c0_32 = arith.constant 0 : index
    %73 = vector.load %arg5[%c3_31, %c0_32] : memref<4x128xf32, #tpu.memory_space<vmem>>, vector<1x128xf32>
    %74 = vector.broadcast %73 : vector<1x128xf32> to vector<8x128xf32>
    %75 = arith.mulf %74, %70 : vector<8x128xf32>
    %76 = arith.select %72, %70, %75 : vector<8x128xi1>, vector<8x128xf32>
    %77 = arith.truncf %76 : vector<8x128xf32> to vector<8x128xbf16>
    %c0_33 = arith.constant 0 : index
    %c0_34 = arith.constant 0 : index
    %78 = vector.load %arg6[%c0_33, %c0_34] : memref<128x128xbf16, #tpu.memory_space<vmem>>, vector<128x128xbf16>
    %cst_35 = arith.constant dense<0.000000e+00> : vector<8x128xf32>
    %79 = tpu.matmul %77, %78, %cst_35 {dimension_numbers = #tpu.dot_dimension_numbers<[1], [0], [0], [1], [0, 0, 1, 1], [], []>} : vector<8x128xbf16>, vector<128x128xbf16>, vector<8x128xf32> -> vector<8x128xf32>
    %c0_36 = arith.constant 0 : index
    %c0_37 = arith.constant 0 : index
    %80 = vector.load %arg7[%c0_36, %c0_37] : memref<1x128xf32, #tpu.memory_space<vmem>>, vector<1x128xf32>
    %81 = vector.broadcast %80 : vector<1x128xf32> to vector<8x128xf32>
    %82 = arith.addf %79, %81 : vector<8x128xf32>
    %c0_38 = arith.constant 0 : index
    %c0_39 = arith.constant 0 : index
    %83 = vector.load %arg8[%c0_38, %c0_39] : memref<8x128xf32, #tpu.memory_space<vmem>>, vector<8x128xf32>
    tpu.vector_store %arg8[%c0_38, %c0_39], %82 {strides = array<i32>} : memref<8x128xf32, #tpu.memory_space<vmem>>, vector<8x128xf32>,
    return
  }
  func.func @transform_0(%arg0: i32) -> (i32, i32) {
    %c0_i32 = arith.constant 0 : i32
    %c0_i32_0 = arith.constant 0 : i32
    return %arg0, %c0_i32 : i32, i32
  }
  func.func @transform_1(%arg0: i32) -> (i32, i32) {
    %c0_i32 = arith.constant 0 : i32
    %c0_i32_0 = arith.constant 0 : i32
    %c0_i32_1 = arith.constant 0 : i32
    return %c0_i32, %c0_i32_0 : i32, i32
  }
  func.func @transform_2(%arg0: i32) -> (i32, i32) {
    %c0_i32 = arith.constant 0 : i32
    %c0_i32_0 = arith.constant 0 : i32
    %c0_i32_1 = arith.constant 0 : i32
    return %c0_i32, %c0_i32_0 : i32, i32
  }
  func.func @transform_3(%arg0: i32) -> (i32, i32) {
    %c0_i32 = arith.constant 0 : i32
    %c0_i32_0 = arith.constant 0 : i32
    %c0_i32_1 = arith.constant 0 : i32
    return %c0_i32, %c0_i32_0 : i32, i32
  }
  func.func @transform_4(%arg0: i32) -> (i32, i32) {
    %c0_i32 = arith.constant 0 : i32
    %c0_i32_0 = arith.constant 0 : i32
    %c0_i32_1 = arith.constant 0 : i32
    return %c0_i32, %c0_i32_0 : i32, i32
  }
  func.func @transform_5(%arg0: i32) -> (i32, i32) {
    %c0_i32 = arith.constant 0 : i32
    %c0_i32_0 = arith.constant 0 : i32
    %c0_i32_1 = arith.constant 0 : i32
    return %c0_i32, %c0_i32_0 : i32, i32
  }
  func.func @transform_6(%arg0: i32) -> (i32, i32) {
    %c0_i32 = arith.constant 0 : i32
    %c0_i32_0 = arith.constant 0 : i32
    %c0_i32_1 = arith.constant 0 : i32
    return %c0_i32, %c0_i32_0 : i32, i32
  }
  func.func @transform_7(%arg0: i32) -> (i32, i32) {
    %c0_i32 = arith.constant 0 : i32
    %c0_i32_0 = arith.constant 0 : i32
    return %arg0, %c0_i32 : i32, i32
  }
}

</mosaic_0001>

<bundles_post_ra>
// kernel: _encoder_forward_padded.1
= control target key start
LH: loop header
LB: loop body
LE: loop exit
PB: predicated region body
PF: predicated region fallthrough
CT: control target
= control target key end

     0   :  { %12 = vsyncpa [#allocation3], 0  ;;  %s692_s0 = inlined_call_operand.vmem [shape: f32[8,128], index: 0, kind: input, shape index: {}]   ;;  %s693_s1 = inlined_call_operand.hbm [shape: bf16[128,128], index: 1, kind: input, shape index: {}]   ;;  %s694_s2 = inlined_call_operand.vmem [shape: f32[4,128], index: 2, kind: input, shape index: {}]   ;;  %s695_s3 = inlined_call_operand.hbm [shape: bf16[128,128], index: 3, kind: input, shape index: {}]   ;;  %s696_s4 = inlined_call_operand.vmem [shape: f32[4,128], index: 4, kind: input, shape index: {}]   ;;  %s697_s5 = inlined_call_operand.hbm [shape: bf16[128,128], index: 5, kind: input, shape index: {}]   ;;  %s698_s6 = inlined_call_operand.vmem [shape: f32[1,128], index: 6, kind: input, shape index: {}]   ;;  %s699_s7 = inlined_call_operand.vmem [shape: f32[8,128], index: 7, kind: output, shape index: {}]  }
   0x1   :  { %13 = vsyncpa [#allocation5], 0  ;;  %s35_s26 = sshll.u32 %s695_s3, 4  ;;  %s605_s27 = smov [#allocation4]   ;;  %s36_s26 = int_to_ptr.hbm [resolvable:$true] %s35_s26 }
   0x2   :  { %s37_s28 = sshll.u32 %s605_s27, 4  ;;  %s20_s8 = sshll.u32 %s693_s1, 4  ;;  %s38_s28 = int_to_ptr.vmem [resolvable:$true] %s37_s28  ;;  %s21_s8 = int_to_ptr.hbm [resolvable:$true] %s20_s8 }
   0x3   :  { %s606_s9 = smov 64   ;;  %s607_s10 = smov 4  }
   0x4   :  { %43 = dma.hbm_to_vmem [thread:$0]  %s36_s26, 1024, %s38_s28, [#allocation5], %s606_s9, %s606_s9, %s607_s10  }
   0x5   :  { %s608_s11 = smov [#allocation2]   ;;  %s50_s15 = sshll.u32 %s697_s5, 4  ;;  %s51_s15 = int_to_ptr.hbm [resolvable:$true] %s50_s15 }
   0x6   :  { %s22_s12 = sshll.u32 %s608_s11, 4  ;;  %s609_s3 = smov [#allocation6]   ;;  %s23_s12 = int_to_ptr.vmem [resolvable:$true] %s22_s12 }
   0x7   :  { %28 = dma.hbm_to_vmem [thread:$0]  %s21_s8, 1024, %s23_s12, [#allocation3], %s606_s9, %s606_s9, %s607_s10  }
   0x8   :  { %s52_s16 = sshll.u32 %s609_s3, 4  ;;  %s53_s16 = int_to_ptr.vmem [resolvable:$true] %s52_s16 }
   0x9   :  { %58 = dma.hbm_to_vmem [thread:$0]  %s51_s15, 1024, %s53_s16, [#allocation5], %s606_s9, %s606_s9, %s607_s10  }
   0xa   :  { %601 = dma.done.wait [#allocation3], 1024  }
   0xb   :  { %602 = vsyncadd [#allocation3], 4294966272 }
   0xc   :  { %603 = dma.done.wait [#allocation5], 2048  }
   0xd   :  { %604 = vsyncadd [#allocation5], 4294965248  ;;  %v494_v0 = vld [vmem:[#allocation2 + $0x38] sm:$0xff]  ;;  %v493_v1 = vld [vmem:[#allocation2 + $0x30] sm:$0xff] }
   0xe   :  { %141 = vmatpush.bf16.msra.mxu0 %v494_v0  ;;  %v492_v2 = vld [vmem:[#allocation2 + $0x28] sm:$0xff]  ;;  %v491_v3 = vld [vmem:[#allocation2 + $0x20] sm:$0xff]  ;;  %v490_v4 = vld [vmem:[#allocation2 + $0x18] sm:$0xff] }
   0xf   :  { %v489_v5 = vld [vmem:[#allocation2 + $0x10] sm:$0xff]  ;;  %v488_v6 = vld [vmem:[#allocation2 + $0x8] sm:$0xff]  ;;  %v487_v7 = vld [vmem:[#allocation2] sm:$0xff] }
  0x10   :  { %v73_v8 = vld [vmem:[%s692_s0] sm:$0xff]  ;;  %v502_v18 = vld [vmem:[#allocation4 + $0x38] sm:$0xff]  ;;  %v501_v19 = vld [vmem:[#allocation4 + $0x30] sm:$0xff] }
  0x11   :  { %v74_v9 = vpack.c.bf16 %v73_v8, %v73_v8  ;;  %v516_v10 = vld [vmem:[%s694_s2] ss:$0 sm:$0xff]  ;;  %255 = vmatpush.bf16.msra.mxu1 %v502_v18  ;;  %v500_v20 = vld [vmem:[#allocation4 + $0x28] sm:$0xff]  ;;  %v498_v22 = vld [vmem:[#allocation4 + $0x18] sm:$0xff] }
  0x12   :  { %142 = vmatpush.bf16.msra.mxu0 %v493_v1  ;;  %v499_v21 = vld [vmem:[#allocation4 + $0x20] sm:$0xff]  ;;  %v497_v23 = vld [vmem:[#allocation4 + $0x10] sm:$0xff]  ;;  %v496_v24 = vld [vmem:[#allocation4 + $0x8] sm:$0xff] }
  0x13   :  { %v495_v26 = vld [vmem:[#allocation4] sm:$0xff]  ;;  %v510_v56 = vld [vmem:[#allocation6 + $0x38] sm:$0xff]  ;;  %v509_v57 = vld [vmem:[#allocation6 + $0x30] sm:$0xff] }
  0x14   :  { %v517_v38 = vld [vmem:[%s694_s2 + $0x1] ss:$0 sm:$0xff]  ;;  %v518_v41 = vld [vmem:[%s694_s2 + $0x2] ss:$0 sm:$0xff]  ;;  %v519_v43 = vld [vmem:[%s694_s2 + $0x3] ss:$0 sm:$0xff]  ;;  %371 = vmatpush.bf16.msra.mxu2 %v510_v56 }
  0x15   :  { %256 = vmatpush.bf16.msra.mxu1 %v501_v19  ;;  %v520_v48 = vld [vmem:[%s696_s4] ss:$0 sm:$0xff]  ;;  %v508_v58 = vld [vmem:[#allocation6 + $0x28] sm:$0xff]  ;;  %v506_v60 = vld [vmem:[#allocation6 + $0x18] sm:$0xff] }
  0x16   :  { %143 = vmatpush.bf16.msra.mxu0 %v492_v2  ;;  %v507_v59 = vld [vmem:[#allocation6 + $0x20] sm:$0xff]  ;;  %v505_v61 = vld [vmem:[#allocation6 + $0x10] sm:$0xff]  ;;  %v504_v62 = vld [vmem:[#allocation6 + $0x8] sm:$0xff] }
  0x17   :  { %v503_v0 = vld [vmem:[#allocation6] sm:$0xff] }
  0x18   :  { %372 = vmatpush.bf16.msra.mxu2 %v509_v57 }
  0x19   :  { %257 = vmatpush.bf16.msra.mxu1 %v500_v20 }
  0x1a   :  { %144 = vmatpush.bf16.msra.mxu0 %v491_v3 }
  0x1c   :  { %373 = vmatpush.bf16.msra.mxu2 %v508_v58 }
  0x1d   :  { %258 = vmatpush.bf16.msra.mxu1 %v499_v21 }
  0x1e   :  { %145 = vmatpush.bf16.msra.mxu0 %v490_v4 }
  0x20   :  { %374 = vmatpush.bf16.msra.mxu2 %v507_v59 }
  0x21   :  { %259 = vmatpush.bf16.msra.mxu1 %v498_v22  ;;  %v524_v22 = vld [vmem:[%s698_s6] ss:$0 sm:$0xff] }
  0x22   :  { %146 = vmatpush.bf16.msra.mxu0 %v489_v5 }
  0x24   :  { %375 = vmatpush.bf16.msra.mxu2 %v506_v60 }
  0x25   :  { %260 = vmatpush.bf16.msra.mxu1 %v497_v23 }
  0x26   :  { %147 = vmatpush.bf16.msra.mxu0 %v488_v6 }
  0x28   :  { %376 = vmatpush.bf16.msra.mxu2 %v505_v61 }
  0x29   :  { %261 = vmatpush.bf16.msra.mxu1 %v496_v24 }
  0x2a   :  { %148 = vmatpush.bf16.msra.mxu0 %v487_v7 }
  0x2c   :  { %377 = vmatpush.bf16.msra.mxu2 %v504_v62 }
  0x2d   :  { %149 = vmatmul.bf16.vlgmr.msra.gmra.mxu0 %v74_v9  ;;  %262 = vmatpush.bf16.msra.mxu1 %v495_v26 }
  0x30   :  { %378 = vmatpush.bf16.msra.mxu2 %v503_v0 }
  0xaa   :  { %v150_v11 = vpop.f32.mrf.mxu0 }
  0xab   :  { %v151_v12 = vadd.f32 %v516_v10, %v150_v11 }
  0xad   :  { %154 = vadd.xlane.f32.xlu0 %v151_v12 }
  0xb2   :  { %v152_v13 = vpop.f32.mrf.mxu0 }
 0x120   :  { %v155_v14 = vpop.xlane.xlu0 %154 }
 0x121   :  { %v156_v15 = vmul.f32 0.015625, %v155_v14 }
 0x123   :  { %v157_v16 = vsub.f32 %v151_v12, %v156_v15  ;;  %v161_v25 = vmul.f32 %v156_v15, %v156_v15  ;;  %v521_v12 = vld [vmem:[%s696_s4 + $0x1] ss:$0 sm:$0xff]  ;;  %v522_v15 = vld [vmem:[%s696_s4 + $0x2] ss:$0 sm:$0xff] }
 0x125   :  { %v158_v17 = vmul.f32 %v157_v16, %v157_v16  ;;  %v162_v27 = vmul.f32 64.0, %v161_v25 }
 0x127   :  { %159 = vadd.xlane.f32.xlu0 %v158_v17  ;;  %v523_v17 = vld [vmem:[%s696_s4 + $0x3] ss:$0 sm:$0xff] }
 0x19a   :  { %v160_v28 = vpop.xlane.xlu0 %159 }
 0x19b   :  { %v163_v29 = vsub.f32 %v160_v28, %v162_v27 }
 0x19d   :  { %v164_v30 = vmul.f32 0.015625, %v163_v29 }
 0x19f   :  { %v165_v31 = vadd.f32 1e-05, %v164_v30 }
 0x1a1   :  { %525 = vrsqrt.f32 %v165_v31  ;;  %vm172_vm1 = vweird.f32 %v165_v31 }
 0x1a7   :  { %v526_v32 = vpop.eup %525 }
 0x1a8   :  { %v167_v33 = vmul.f32 %v526_v32, %v165_v31  ;;  %vm173_vm0 = vweird.f32 %v526_v32 }
 0x1a9   :  { %vm174_vm2 = vmor %vm172_vm1, %vm173_vm0 }
 0x1aa   :  { %v168_v34 = vmul.f32 %v526_v32, %v167_v33 }
 0x1ac   :  { %v169_v35 = vmul.f32 0.5, %v168_v34 }
 0x1ae   :  { %v170_v36 = vsub.f32 1.5, %v169_v35 }
 0x1b0   :  { %v171_v37 = vmul.f32 %v526_v32, %v170_v36 }
 0x1b2   :  { %v175_v39 = vsel %vm174_vm2, %v526_v32, %v171_v37 }
 0x1b3   :  { %v176_v40 = vmul.f32 %v175_v39, %v157_v16 }
 0x1b5   :  { %v179_v42 = vmul.f32 %v517_v38, %v176_v40 }
 0x1b7   :  { %v182_v44 = vadd.f32 %v518_v41, %v179_v42 }
 0x1b9   :  { %vm183_vm3 = vcmp.ge.f32.partialorder %v182_v44, 0.0  ;;  %v186_v45 = vmul.f32 %v519_v43, %v182_v44 }
 0x1bb   :  { %v187_v46 = vsel %vm183_vm3, %v182_v44, %v186_v45 }
 0x1bc   :  { %v188_v47 = vpack.c.bf16 %v187_v46, %v187_v46 }
 0x1be   :  { %263 = vmatmul.bf16.vlgmr.msra.gmra.mxu1 %v188_v47 }
 0x23b   :  { %v264_v49 = vpop.f32.mrf.mxu1 }
 0x23c   :  { %v265_v50 = vadd.f32 %v520_v48, %v264_v49 }
 0x23e   :  { %268 = vadd.xlane.f32.xlu1 %v265_v50 }
 0x243   :  { %v266_v51 = vpop.f32.mrf.mxu1 }
 0x2b1   :  { %v269_v52 = vpop.xlane.xlu1 %268 }
 0x2b2   :  { %v270_v53 = vmul.f32 0.03125, %v269_v52 }
 0x2b4   :  { %v271_v54 = vsub.f32 %v265_v50, %v270_v53  ;;  %v275_v63 = vmul.f32 %v270_v53, %v270_v53 }
 0x2b6   :  { %v272_v55 = vmul.f32 %v271_v54, %v271_v54  ;;  %v276_v1 = vmul.f32 96.0, %v275_v63 }
 0x2b8   :  { %273 = vadd.xlane.f32.xlu1 %v272_v55 }
 0x32b   :  { %v274_v2 = vpop.xlane.xlu1 %273 }
 0x32c   :  { %v277_v3 = vsub.f32 %v274_v2, %v276_v1 }
 0x32e   :  { %v278_v4 = vmul.f32 0.03125, %v277_v3 }
 0x330   :  { %v279_v5 = vadd.f32 1e-05, %v278_v4 }
 0x332   :  { %527 = vrsqrt.f32 %v279_v5  ;;  %vm286_vm5 = vweird.f32 %v279_v5 }
 0x338   :  { %v528_v6 = vpop.eup %527 }
 0x339   :  { %v281_v7 = vmul.f32 %v528_v6, %v279_v5  ;;  %vm287_vm4 = vweird.f32 %v528_v6 }
 0x33a   :  { %vm288_vm6 = vmor %vm286_vm5, %vm287_vm4 }
 0x33b   :  { %v282_v8 = vmul.f32 %v528_v6, %v281_v7 }
 0x33d   :  { %v283_v9 = vmul.f32 0.5, %v282_v8 }
 0x33f   :  { %v284_v10 = vsub.f32 1.5, %v283_v9 }
 0x341   :  { %v285_v11 = vmul.f32 %v528_v6, %v284_v10 }
 0x343   :  { %v289_v13 = vsel %vm288_vm6, %v528_v6, %v285_v11 }
 0x344   :  { %v290_v14 = vmul.f32 %v289_v13, %v271_v54 }
 0x346   :  { %v293_v16 = vmul.f32 %v521_v12, %v290_v14 }
 0x348   :  { %v296_v18 = vadd.f32 %v522_v15, %v293_v16 }
 0x34a   :  { %vm297_vm7 = vcmp.ge.f32.partialorder %v296_v18, 0.0  ;;  %v300_v19 = vmul.f32 %v523_v17, %v296_v18 }
 0x34c   :  { %v301_v20 = vsel %vm297_vm7, %v296_v18, %v300_v19 }
 0x34d   :  { %v302_v21 = vpack.c.bf16 %v301_v20, %v301_v20 }
 0x34f   :  { %379 = vmatmul.bf16.vlgmr.msra.gmra.mxu2 %v302_v21 }
 0x3d2   :  { %v380_v23 = vpop.f32.mrf.mxu2 }
 0x3d3   :  { %v381_v24 = vadd.f32 %v524_v22, %v380_v23 }
 0x3d5   :  { %384 = vst [vmem:[%s699_s7] sm:$0xff] %v381_v24 }
 0x3da   :  { %v382_v25 = vpop.f32.mrf.mxu2 }
 0x3db   :  { %389 = vsyncpa [#allocation3], 1 }
 0x3dc   :  { %390 = vsyncpa [#allocation5], 1 }

</bundles_post_ra>
